<compile_context>
chip_gen: v5e
topology: v5e:2x2
jax: 0.10.0
libtpu: 0.0.40
codegen_flags: <defaults>
</compile_context>

<pallas_src>
import functools

import jax
import jax.numpy as jnp
from jax import lax
from jax.experimental import pallas as pl
from jax.experimental.pallas import tpu as pltpu


def _round_up(x, m):
    return ((x + m - 1) // m) * m


def _xtrans_fused_kernel(xT_ref, wT_ref, b_ref, o_ref):
    """xT_ref: [C*k, tile_m] (points on lanes), wT_ref: [k*k, C*k],
    b_ref: [k*k, 1] (fp32), o_ref: [k*k, tile_m] (fp32)."""
    acc = jnp.dot(wT_ref[...], xT_ref[...], preferred_element_type=jnp.float32)
    o_ref[...] = (acc + b_ref[...]).astype(o_ref.dtype)


def _grouped_to_block_diag(w, k):
    """w: grouped 1x1 conv weight [k*k, k] -> dense block-diagonal [k*k, k*k]."""
    blocks = w.reshape(k, k, k)                  # [group, out_in_group, in_in_group]
    eye = jnp.eye(k, dtype=w.dtype)              # group selector
    return jnp.einsum("goi,gh->gohi", blocks, eye).reshape(k * k, k * k)


@functools.partial(jax.jit, static_argnames=("k", "tile_m", "compute_dtype"))
def xtransform_forward(x, params, *, k, tile_m=2048, compute_dtype=jnp.bfloat16):
    """x: [B, C, N, k] float32  ->  trans: [B, N, k, k] float32.

    tile_m: points per grid step (rounded up to a multiple of 128).  For
    realistic M = B*N this yields grid >= 2 so v7x's two TensorCores both get
    work via the "parallel" grid axis.
    compute_dtype: dtype of the streamed operands (x, fused weight).  bf16
    halves the dominant HBM read stream; accumulation stays fp32 on the MXU.
    """
    B, C, N, kw = x.shape
    assert kw == k
    kk = k * k
    ck = C * k
    M = B * N

    w1, b1, w2, b2, w3, b3 = (
        params["w1"], params["b1"], params["w2"],
        params["b2"], params["w3"], params["b3"],
    )

    # ---- trace-time algebraic fusion of the three affine stages (exact) ----
    # conv1 weight [kk, C, 1, k] -> [kk, C*k] -> transpose -> [C*k, kk]
    w1_mat = w1.reshape(kk, ck).T.astype(jnp.float32)
    # grouped 1x1 convs [kk, k, 1, 1] -> block-diagonal [kk, kk], transposed
    w2_mat = _grouped_to_block_diag(w2.reshape(kk, k), k).T.astype(jnp.float32)
    w3_mat = _grouped_to_block_diag(w3.reshape(kk, k), k).T.astype(jnp.float32)
    w_fused = w1_mat @ w2_mat @ w3_mat                         # [ck, kk]
    b_fused = b1 @ w2_mat @ w3_mat + b2 @ w3_mat + b3          # [kk]

    wT = w_fused.T.astype(compute_dtype)                       # [kk, ck], resident
    b_col = b_fused.reshape(kk, 1).astype(jnp.float32)         # [kk, 1], resident

    # ---- lane-dense layout: put the big point dim M on the lane axis ----
    # x[b,c,n,kw] -> X^T[(c,kw), (b,n)]  (single wrapper-side transpose pass)
    x_t = jnp.transpose(x, (1, 3, 0, 2)).reshape(ck, M).astype(compute_dtype)

    tile_m_eff = _round_up(min(tile_m, _round_up(M, 128)), 128)
    M_pad = _round_up(M, tile_m_eff)
    if M_pad != M:
        # NOTE: padded columns end up holding bias-only values; they are
        # sliced off below and must never be exposed downstream.
        x_t = jnp.pad(x_t, ((0, 0), (0, M_pad - M)))

    grid = (M_pad // tile_m_eff,)

    # ---- VMEM budget / compiler params (v5e default scoped VMEM is 16 MiB) ----
    in_bytes = jnp.dtype(compute_dtype).itemsize
    x_blk_bytes = ck * tile_m_eff * in_bytes
    o_blk_bytes = kk * tile_m_eff * 4
    w_bytes = kk * ck * in_bytes + kk * 4
    needed = 2 * (x_blk_bytes + o_blk_bytes) + w_bytes          # double-buffered
    cp_kwargs = dict(dimension_semantics=("parallel",))
    if needed > 12 * 1024 * 1024:
        # Only raise the scoped-VMEM limit when big tiles actually need it;
        # cap below v7x's 64 MiB physical VMEM.
        cp_kwargs["vmem_limit_bytes"] = int(min(2 * needed, 48 * 1024 * 1024))

    # Advisory cost estimate: the kernel is HBM-bandwidth bound, tell XLA so.
    cost = pl.CostEstimate(
        flops=2 * M_pad * ck * kk,
        transcendentals=0,
        bytes_accessed=M_pad * ck * in_bytes + M_pad * kk * 4 + w_bytes,
    )

    out = pl.pallas_call(
        _xtrans_fused_kernel,
        out_shape=jax.ShapeDtypeStruct((kk, M_pad), jnp.float32),
        grid_spec=pltpu.PrefetchScalarGridSpec(
            num_scalar_prefetch=0,
            grid=grid,
            in_specs=[
                # X^T tile: lane-dense (tile_m multiple of 128 on lanes)
                pl.BlockSpec((ck, tile_m_eff), lambda i: (0, i)),
                # fused weight + bias: constant index_map -> stays VMEM-resident
                pl.BlockSpec((kk, ck), lambda i: (0, 0)),
                pl.BlockSpec((kk, 1), lambda i: (0, 0)),
            ],
            out_specs=pl.BlockSpec((kk, tile_m_eff), lambda i: (0, i)),
        ),
        compiler_params=pltpu.CompilerParams(**cp_kwargs),
        cost_estimate=cost,
    )(x_t, wT, b_col)

    # Drop padding, then H^T[kk, M] -> H[M, kk] -> [B, N, k, k]
    trans = out[:, :M].T.reshape(B, N, k, k)
    return trans


def init_params(key, C, k):
    """Deterministic synthetic parameters matching the PyTorch conv shapes."""
    kk = k * k
    ks = jax.random.split(key, 6)

    def u(kk_key, shape, fan_in):
        bound = 1.0 / jnp.sqrt(float(fan_in))
        return jax.random.uniform(kk_key, shape, jnp.float32, -bound, bound)

    return {
        "w1": u(ks[0], (kk, C, 1, k), C * k),     # Conv2d(C, kk, (1,k))
        "b1": u(ks[1], (kk,), C * k),
        "w2": u(ks[2], (kk, k, 1, 1), k),         # Conv2d(kk, kk, 1, groups=k)
        "b2": u(ks[3], (kk,), k),
        "w3": u(ks[4], (kk, k, 1, 1), k),         # Conv2d(kk, kk, 1, groups=k)
        "b3": u(ks[5], (kk,), k),
    }


def reference_forward(x, params, k):
    """Pure-JAX reference using real conv ops (NCHW / OIHW)."""
    dn = ("NCHW", "OIHW", "NCHW")
    y = lax.conv_general_dilated(
        x, params["w1"], (1, 1), "VALID", dimension_numbers=dn
    ) + params["b1"][None, :, None, None]
    y = lax.conv_general_dilated(
        y, params["w2"], (1, 1), "VALID", dimension_numbers=dn,
        feature_group_count=k,
    ) + params["b2"][None, :, None, None]
    y = lax.conv_general_dilated(
        y, params["w3"], (1, 1), "VALID", dimension_numbers=dn,
        feature_group_count=k,
    ) + params["b3"][None, :, None, None]
    B, kk, N, _ = y.shape
    return jnp.transpose(y, (0, 2, 3, 1)).reshape(B, N, k, k)


if __name__ == "__main__":
    B, C, N, k = 2, 4, 16, 8
    key = jax.random.PRNGKey(0)
    kx, kp = jax.random.split(key)
    x = jax.random.normal(kx, (B, C, N, k), jnp.float32)
    params = init_params(kp, C, k)

    ref = jax.block_until_ready(reference_forward(x, params, k))

    # fp32 operands: fused kernel must match the conv reference tightly.
    out_f32 = jax.block_until_ready(
        xtransform_forward(x, params, k=k, compute_dtype=jnp.float32))
    assert out_f32.shape == (B, N, k, k), out_f32.shape
    assert jnp.allclose(out_f32, ref, atol=1e-4, rtol=1e-4), (
        float(jnp.max(jnp.abs(out_f32 - ref))))

    # default bf16 operands (fp32 accumulation): loose tolerance.
    out_bf16 = jax.block_until_ready(xtransform_forward(x, params, k=k))
    assert out_bf16.shape == (B, N, k, k), out_bf16.shape
    assert jnp.allclose(out_bf16, ref, atol=3e-2, rtol=3e-2), (
        float(jnp.max(jnp.abs(out_bf16 - ref))))

    print("KERNEL_OK")
</pallas_src>

<mosaic_0001>
module attributes {stable_mosaic.version = 11 : i64} {
  func.func @_xtrans_fused_kernel(%arg0: i32, %arg1: memref<32x128xf32, #tpu.memory_space<vmem>>, %arg2: memref<64x32xf32, #tpu.memory_space<vmem>>, %arg3: memref<64x1xf32, #tpu.memory_space<vmem>>, %arg4: memref<64x128xf32, #tpu.memory_space<vmem>>) attributes {dimension_semantics = [#tpu.dimension_semantics<parallel>], iteration_bounds = array<i64: 1>, scalar_prefetch = 0 : i64, scratch_operands = 0 : i64, tpu.core_type = #tpu.core_type<tc>, window_params = [{transform_indices = @transform_0, window_bounds = array<i64: 32, 128>}, {pipeline_mode = #tpu.pipeline_mode<synchronous>, transform_indices = @transform_1, window_bounds = array<i64: 64, 32>}, {pipeline_mode = #tpu.pipeline_mode<synchronous>, transform_indices = @transform_2, window_bounds = array<i64: 64, 1>}, {transform_indices = @transform_3, window_bounds = array<i64: 64, 128>}]} {
    %c0 = arith.constant 0 : index
    %c0_0 = arith.constant 0 : index
    %0 = vector.load %arg2[%c0, %c0_0] : memref<64x32xf32, #tpu.memory_space<vmem>>, vector<64x32xf32>
    %c0_1 = arith.constant 0 : index
    %c0_2 = arith.constant 0 : index
    %1 = vector.load %arg1[%c0_1, %c0_2] : memref<32x128xf32, #tpu.memory_space<vmem>>, vector<32x128xf32>
    %cst = arith.constant dense<0.000000e+00> : vector<64x128xf32>
    %2 = tpu.matmul %0, %1, %cst {dimension_numbers = #tpu.dot_dimension_numbers<[1], [0], [0], [1], [0, 0, 1, 1], [], []>} : vector<64x32xf32>, vector<32x128xf32>, vector<64x128xf32> -> vector<64x128xf32>
    %c0_3 = arith.constant 0 : index
    %c0_4 = arith.constant 0 : index
    %3 = vector.load %arg3[%c0_3, %c0_4] : memref<64x1xf32, #tpu.memory_space<vmem>>, vector<64x1xf32>
    %4 = vector.broadcast %3 : vector<64x1xf32> to vector<64x128xf32>
    %5 = arith.addf %2, %4 : vector<64x128xf32>
    %c0_5 = arith.constant 0 : index
    %c0_6 = arith.constant 0 : index
    %6 = vector.load %arg4[%c0_5, %c0_6] : memref<64x128xf32, #tpu.memory_space<vmem>>, vector<64x128xf32>
    tpu.vector_store %arg4[%c0_5, %c0_6], %5 {strides = array<i32>} : memref<64x128xf32, #tpu.memory_space<vmem>>, vector<64x128xf32>,
    return
  }
  func.func @transform_0(%arg0: i32) -> (i32, i32) {
    %c0_i32 = arith.constant 0 : i32
    %c0_i32_0 = arith.constant 0 : i32
    return %c0_i32, %arg0 : i32, i32
  }
  func.func @transform_1(%arg0: i32) -> (i32, i32) {
    %c0_i32 = arith.constant 0 : i32
    %c0_i32_0 = arith.constant 0 : i32
    %c0_i32_1 = arith.constant 0 : i32
    return %c0_i32, %c0_i32_0 : i32, i32
  }
  func.func @transform_2(%arg0: i32) -> (i32, i32) {
    %c0_i32 = arith.constant 0 : i32
    %c0_i32_0 = arith.constant 0 : i32
    %c0_i32_1 = arith.constant 0 : i32
    return %c0_i32, %c0_i32_0 : i32, i32
  }
  func.func @transform_3(%arg0: i32) -> (i32, i32) {
    %c0_i32 = arith.constant 0 : i32
    %c0_i32_0 = arith.constant 0 : i32
    return %c0_i32, %arg0 : i32, i32
  }
}

</mosaic_0001>

<bundles_post_ra>
// kernel: xtransform_forward.1
= control target key start
LH: loop header
LB: loop body
LE: loop exit
PB: predicated region body
PF: predicated region fallthrough
CT: control target
= control target key end

     0   :  { %v176_v0 = vmov 0   ;;  %vm74_vm0 = vcmask 261120   ;;  %s289_s2 = inlined_call_operand.vmem [shape: f32[64,1], index: 2, kind: input, shape index: {}]   ;;  %s290_s0 = inlined_call_operand.vmem [shape: f32[32,128], index: 0, kind: input, shape index: {}]   ;;  %s291_s1 = inlined_call_operand.vmem [shape: f32[64,32], index: 1, kind: input, shape index: {}]   ;;  %s292_s3 = inlined_call_operand.vmem [shape: f32[64,128], index: 3, kind: output, shape index: {}]  }
   0x1   :  { %174 = vset.pattern.permute.xlu1 %v176_v0  ;;  %173 = vset.pattern.permute.xlu0 %v176_v0  ;;  %v28_v1 = vld [vmem:[%s289_s2 + $0x10] sm:$0xff]  ;;  %v26_v2 = vld [vmem:[%s289_s2] sm:$0xff]  ;;  %v25_v3 = vld [vmem:[%s290_s0 + $0x18] sm:$0xff] }
   0x2   :  { %46 = vperm.xlu1 %174, %v28_v1   ;;  %36 = vperm.xlu0 %173, %v26_v2   ;;  %v24_v4 = vld [vmem:[%s290_s0 + $0x10] sm:$0xff]  ;;  %v23_v5 = vld [vmem:[%s290_s0 + $0x8] sm:$0xff]  ;;  %v22_v6 = vld [vmem:[%s290_s0] sm:$0xff] }
   0x3   :  { %111 = vmatpush.msra.mxu0 %v25_v3  ;;  %160 = vmatpush.msra.mxu1 %v25_v3  ;;  %v14_v7 = vld [vmem:[%s291_s1] sm:$0xff]  ;;  %v16_v8 = vld [vmem:[%s291_s1 + $0x10] sm:$0xff]  ;;  %v29_v11 = vld [vmem:[%s289_s2 + $0x18] sm:$0xff] }
   0x4   :  { %161 = vmatpush.msra.mxu2 %v25_v3  ;;  %162 = vmatpush.msra.mxu3 %v25_v3  ;;  %v18_v9 = vld [vmem:[%s291_s1 + $0x20] sm:$0xff]  ;;  %v20_v10 = vld [vmem:[%s291_s1 + $0x30] sm:$0xff]  ;;  %v27_v12 = vld [vmem:[%s289_s2 + $0x8] sm:$0xff] }
   0x5   :  { %112 = vmatpush.msra.mxu0 %v24_v4  ;;  %163 = vmatpush.msra.mxu1 %v24_v4  ;;  %v30_v13 = vld [vmem:[%s289_s2 + $0x20] sm:$0xff]  ;;  %v15_v14 = vld [vmem:[%s291_s1 + $0x8] sm:$0xff]  ;;  %v17_v15 = vld [vmem:[%s291_s1 + $0x18] sm:$0xff] }
   0x6   :  { %164 = vmatpush.msra.mxu2 %v24_v4  ;;  %165 = vmatpush.msra.mxu3 %v24_v4  ;;  %v19_v16 = vld [vmem:[%s291_s1 + $0x28] sm:$0xff]  ;;  %v21_v17 = vld [vmem:[%s291_s1 + $0x38] sm:$0xff]  ;;  %v32_v19 = vld [vmem:[%s289_s2 + $0x30] sm:$0xff] }
   0x7   :  { %113 = vmatpush.msra.mxu0 %v23_v5  ;;  %166 = vmatpush.msra.mxu1 %v23_v5  ;;  %v33_v18 = vld [vmem:[%s289_s2 + $0x38] sm:$0xff]  ;;  %v31_v20 = vld [vmem:[%s289_s2 + $0x28] sm:$0xff] }
   0x8   :  { %167 = vmatpush.msra.mxu2 %v23_v5  ;;  %168 = vmatpush.msra.mxu3 %v23_v5 }
   0x9   :  { %114 = vmatpush.msra.mxu0 %v22_v6  ;;  %169 = vmatpush.msra.mxu1 %v22_v6 }
   0xa   :  { %170 = vmatpush.msra.mxu2 %v22_v6  ;;  %171 = vmatpush.msra.mxu3 %v22_v6 }
   0xb   :  { %152 = vmatmul.msk.f32.vlgmr.msra.gmra.mxu0 %vm74_vm0, %v14_v7  ;;  %154 = vmatmul.msk.f32.vlgmr.msra.gmra.mxu1 %vm74_vm0, %v16_v8 }
   0xc   :  { %156 = vmatmul.msk.f32.vlgmr.msra.gmra.mxu2 %vm74_vm0, %v18_v9  ;;  %158 = vmatmul.msk.f32.vlgmr.msra.gmra.mxu3 %vm74_vm0, %v20_v10 }
   0xd   :  { %51 = vperm.xlu1 %174, %v29_v11   ;;  %41 = vperm.xlu0 %173, %v27_v12  }
   0xe   :  { %175 = vset.pattern.permute.xlu2 %v176_v0 }
   0xf   :  { %56 = vperm.xlu2 %175, %v30_v13  }
  0x13   :  { %153 = vmatmul.msk.f32.gmra.mxu0 %vm74_vm0, %v15_v14  ;;  %155 = vmatmul.msk.f32.gmra.mxu1 %vm74_vm0, %v17_v15 }
  0x14   :  { %157 = vmatmul.msk.f32.gmra.mxu2 %vm74_vm0, %v19_v16  ;;  %159 = vmatmul.msk.f32.gmra.mxu3 %vm74_vm0, %v21_v17 }
  0x15   :  { %71 = vperm.xlu1 %174, %v33_v18   ;;  %66 = vperm.xlu0 %173, %v32_v19  }
  0x17   :  { %61 = vperm.xlu2 %175, %v31_v20  }
  0x69   :  { %v57_v29 = vpop.permute.xlu2 %56 }
  0x71   :  { %v62_v40 = vpop.permute.xlu2 %61 }
  0x74   :  { %v37_v21 = vpop.permute.xlu0 %36  ;;  %v47_v22 = vpop.permute.xlu1 %46 }
  0x7f   :  { %v42_v23 = vpop.permute.xlu0 %41  ;;  %v52_v28 = vpop.permute.xlu1 %51 }
  0x87   :  { %v67_v30 = vpop.permute.xlu0 %66  ;;  %v72_v39 = vpop.permute.xlu1 %71 }
  0x88   :  { %v116_v24 = vpop.f32.mrf.mxu0  ;;  %v122_v25 = vpop.f32.mrf.mxu1 }
  0x89   :  { %v117_v26 = vadd.f32 %v116_v24, %v37_v21  ;;  %v123_v27 = vadd.f32 %v122_v25, %v47_v22 }
  0x8b   :  { %140 = vst [vmem:[%s292_s3] sm:$0xff] %v117_v26 }
  0x8c   :  { %142 = vst [vmem:[%s292_s3 + $0x10] sm:$0xff] %v123_v27 }
  0x8f   :  { %v128_v31 = vpop.f32.mrf.mxu2  ;;  %v134_v32 = vpop.f32.mrf.mxu3 }
  0x90   :  { %v129_v33 = vadd.f32 %v128_v31, %v57_v29  ;;  %v135_v34 = vadd.f32 %v134_v32, %v67_v30  ;;  %v119_v35 = vpop.f32.mrf.mxu0  ;;  %v125_v36 = vpop.f32.mrf.mxu1 }
  0x91   :  { %v120_v37 = vadd.f32 %v119_v35, %v42_v23  ;;  %v126_v38 = vadd.f32 %v125_v36, %v52_v28 }
  0x92   :  { %144 = vst [vmem:[%s292_s3 + $0x20] sm:$0xff] %v129_v33 }
  0x93   :  { %146 = vst [vmem:[%s292_s3 + $0x30] sm:$0xff] %v135_v34 }
  0x94   :  { %141 = vst [vmem:[%s292_s3 + $0x8] sm:$0xff] %v120_v37 }
  0x95   :  { %143 = vst [vmem:[%s292_s3 + $0x18] sm:$0xff] %v126_v38 }
  0x97   :  { %v131_v41 = vpop.f32.mrf.mxu2  ;;  %v137_v42 = vpop.f32.mrf.mxu3 }
  0x98   :  { %v132_v43 = vadd.f32 %v131_v41, %v62_v40  ;;  %v138_v44 = vadd.f32 %v137_v42, %v72_v39 }
  0x9a   :  { %145 = vst [vmem:[%s292_s3 + $0x28] sm:$0xff] %v132_v43 }
  0x9b   :  { %147 = vst [vmem:[%s292_s3 + $0x38] sm:$0xff] %v138_v44 }

</bundles_post_ra>
